<compile_context>
chip_gen: v5e
topology: v5e:2x2
jax: 0.10.0
libtpu: 0.0.40
codegen_flags: <defaults>
</compile_context>

<pallas_src>
import functools

import jax
import jax.numpy as jnp
from jax.experimental import pallas as pl
from jax.experimental.pallas import tpu as pltpu


# ---------------------------------------------------------------------------
# helpers
# ---------------------------------------------------------------------------
def _round_up(v, m):
    return ((v + m - 1) // m) * m


def _apply_activation(y, name):
    """Activation applied in f32 inside the kernel (v5e VPU has no bf16 ALUs)."""
    if name is None or name == "none":
        return y
    if name == "relu":
        return jnp.maximum(y, 0.0)
    if name == "sigmoid":
        return jax.nn.sigmoid(y)
    if name == "tanh":
        return jnp.tanh(y)
    if name == "leakyrelu":
        return jnp.where(y >= 0.0, y, 0.01 * y)
    raise NotImplementedError(f"activation '{name}' is not implemented")


def _vmem_limit_bytes():
    """Per-generation VMEM budget: ~half of physical VMEM, capped at 64 MiB.
    -> 64 MiB on v5e/v6e (128 MiB physical), 32 MiB on v7x (64 MiB physical).
    Falls back to a conservative 32 MiB if the query is unavailable."""
    cap = 64 * 1024 * 1024
    try:
        info = pltpu.get_tpu_info()
        cap = int(getattr(info, "vmem_capacity_bytes", cap))
    except Exception:
        pass
    return int(max(32 * 1024 * 1024, min(cap // 2, 64 * 1024 * 1024)))


def _default_block_rows(H_in, H_out, hidden_max, x_bytes, out_bytes,
                        w_bytes_total, vmem_limit):
    """Derive the row tile from the VMEM budget:
    double-buffered x/out tiles + f32 live intermediates + resident weights."""
    per_row = 2 * H_in * x_bytes + 2 * H_out * out_bytes + 2 * hidden_max * 4
    budget = vmem_limit - 2 * w_bytes_total - (4 << 20)   # headroom
    rows = budget // max(per_row, 1)
    return int(max(1024, min(rows, 8192)))


# ---------------------------------------------------------------------------
# fused MLP kernel
# ---------------------------------------------------------------------------
def _make_fused_mlp_kernel(layer_acts, compute_dtype):
    """Kernel running all Linear(+activation) layers for one row tile.

    Refs layout: (x_ref, w_0, b_0, w_1, b_1, ..., o_ref)
      x_ref: (TN, H_in)       native input dtype (cast in-kernel)
      w_l  : (H_l, H_{l+1})   compute_dtype   (VMEM-resident, constant index_map)
      b_l  : (1, H_{l+1})     float32
      o_ref: (TN, H_out)      output dtype
    """
    n_layers = len(layer_acts)

    def kernel(*refs):
        x_ref = refs[0]
        o_ref = refs[-1]
        # Cast to the MXU operand dtype INSIDE the kernel. A wrapper-side
        # astype would be a separate, un-fused full HBM pass over x.
        h = x_ref[...].astype(compute_dtype)
        for l in range(n_layers):
            w = refs[1 + 2 * l][...]
            b = refs[2 + 2 * l][...]
            # MXU matmul, f32 accumulation; bias + activation stay in f32.
            y = jnp.dot(h, w, preferred_element_type=jnp.float32)
            y = y + b
            y = _apply_activation(y, layer_acts[l])
            is_last = l == n_layers - 1
            # Intermediates never touch HBM; cast back to the compute dtype
            # only to feed the next MXU op.
            h = y if is_last else y.astype(compute_dtype)
        o_ref[...] = h.astype(o_ref.dtype)

    return kernel


def _fused_mlp_call(x2d, params, layer_acts, compute_dtype, block_rows):
    """x2d: (N, H_in). Runs the whole MLP in one pallas_call, tiled over rows.
    No wrapper-side padding: grid = cdiv(N, TN), Pallas clips the last block."""
    N, H_in = x2d.shape
    H_out = params[-1][0].shape[1]
    out_dtype = x2d.dtype
    hidden_max = max(w.shape[1] for w, _ in params)

    x_bytes = jnp.dtype(x2d.dtype).itemsize
    out_bytes = jnp.dtype(out_dtype).itemsize
    w_itemsize = jnp.dtype(compute_dtype).itemsize
    w_bytes_total = sum(w.size * w_itemsize + w.shape[1] * 4 for w, _ in params)

    vmem_limit = _vmem_limit_bytes()

    # --- row tile: VMEM-budget-derived default, >=2 grid steps for megacore.
    A = 16  # valid sublane alignment for both f32 and bf16 row tiles
    if block_rows is None:
        block_rows = _default_block_rows(H_in, H_out, hidden_max, x_bytes,
                                         out_bytes, w_bytes_total, vmem_limit)
    TN = _round_up(min(int(block_rows), max(N, 1)), A)
    if N > A:
        # Cap so the single "parallel" grid axis has >=2 steps when N allows
        # (v7x has 2 TensorCores; a 1-step grid idles the second one).
        TN = min(TN, _round_up(pl.cdiv(N, 2), A))
    grid = (pl.cdiv(N, TN),)

    # --- assemble kernel args + BlockSpecs
    args = [x2d]                                    # native dtype, cast in-kernel
    in_specs = [pl.BlockSpec((TN, H_in), lambda i: (i, 0))]
    for w, b in params:
        w_c = w if w.dtype == compute_dtype else w.astype(compute_dtype)
        b2d = b if b.ndim == 2 else b.reshape(1, -1)
        if b2d.dtype != jnp.float32:
            b2d = b2d.astype(jnp.float32)           # bias stays f32
        args += [w_c, b2d]
        # constant index_maps -> fetched once, VMEM-resident across row tiles
        in_specs += [
            pl.BlockSpec(w_c.shape, lambda i: (0, 0)),
            pl.BlockSpec(b2d.shape, lambda i: (0, 0)),
        ]

    # --- advisory cost estimate for XLA's scheduler
    flops = 2 * N * sum(w.shape[0] * w.shape[1] for w, _ in params)
    transcendentals = N * sum(w.shape[1] for (w, _), a in zip(params, layer_acts)
                              if a in ("sigmoid", "tanh"))
    bytes_accessed = (N * H_in * x_bytes + N * H_out * out_bytes + w_bytes_total)

    kernel = _make_fused_mlp_kernel(tuple(layer_acts), compute_dtype)

    out = pl.pallas_call(
        kernel,
        out_shape=jax.ShapeDtypeStruct((N, H_out), out_dtype),
        grid_spec=pl.GridSpec(
            grid=grid,
            in_specs=in_specs,
            out_specs=pl.BlockSpec((TN, H_out), lambda i: (i, 0)),
        ),
        compiler_params=pltpu.CompilerParams(
            # Row tiles are independent -> shard across v7x's two TensorCores.
            dimension_semantics=("parallel",),
            vmem_limit_bytes=vmem_limit,
        ),
        cost_estimate=pl.CostEstimate(
            flops=int(flops),
            transcendentals=int(transcendentals),
            bytes_accessed=int(bytes_accessed),
        ),
    )(*args)
    return out


# ---------------------------------------------------------------------------
# public API
# ---------------------------------------------------------------------------
def init_mlp_params(key, layers):
    """Deterministic parameter init. Mirrors nn.Linear shapes:
    PyTorch weight is (out, in); we store the transpose (in, out) for x @ W."""
    params = []
    for in_size, out_size in zip(layers[:-1], layers[1:]):
        key, k_w, k_b = jax.random.split(key, 3)
        bound = 1.0 / jnp.sqrt(in_size)
        w = jax.random.uniform(
            k_w, (in_size, out_size), jnp.float32, minval=-bound, maxval=bound)
        b = jax.random.uniform(
            k_b, (out_size,), jnp.float32, minval=-bound, maxval=bound)
        params.append((w, b))
    return params


def prepare_mlp_params(params, compute_dtype=None):
    """One-time (outside-jit) weight cast + bias reshape, so the jitted forward
    never re-casts weights from HBM per call. compute_dtype=jnp.bfloat16 on
    v6e/v7x halves weight HBM/VMEM traffic; biases stay f32."""
    prepared = []
    for w, b in params:
        if compute_dtype is not None and w.dtype != jnp.dtype(compute_dtype):
            w = w.astype(compute_dtype)
        b = jnp.asarray(b, jnp.float32).reshape(1, -1)
        prepared.append((w, b))
    return prepared


def _layer_activations(n_layers, activation, last_activation):
    acts = []
    for l in range(n_layers):
        is_last = l == n_layers - 1
        acts.append(activation if (last_activation or not is_last) else None)
    return acts


@functools.partial(
    jax.jit, static_argnames=("activation", "last_activation", "compute_dtype",
                              "block_rows"))
def mlp_layers_forward(x, params, activation="relu", last_activation=True,
                       compute_dtype=None, block_rows=None):
    """Forward pass of MLPLayers (eval mode: Dropout is identity, bn=False).

    Input may have extra leading dims: (N, *, H_in) -> flattened to 2D for the
    fused kernel, then restored, matching PyTorch Linear broadcasting.

    compute_dtype: MXU-operand dtype; defaults to the weight dtype (pre-cast
    weights once with prepare_mlp_params). Accumulation, bias add and
    activations always run in f32.
    """
    params = list(params)
    orig_shape = x.shape
    x2d = x.reshape(-1, orig_shape[-1])
    compute_dtype = jnp.dtype(compute_dtype if compute_dtype is not None
                              else params[0][0].dtype)
    layer_acts = _layer_activations(len(params), activation, last_activation)

    out2d = _fused_mlp_call(x2d, params, layer_acts, compute_dtype, block_rows)
    return out2d.reshape(*orig_shape[:-1], params[-1][0].shape[1])


# ---------------------------------------------------------------------------
# plain-JAX reference (for correctness checks)
# ---------------------------------------------------------------------------
def _reference_forward(x, params, activation="relu", last_activation=True):
    layer_acts = _layer_activations(len(params), activation, last_activation)
    h = x.reshape(-1, x.shape[-1])
    for (w, b), act in zip(params, layer_acts):
        h = _apply_activation(h @ w + b.reshape(1, -1), act)
    return h.reshape(*x.shape[:-1], params[-1][0].shape[1])


# ---------------------------------------------------------------------------
# demo / self-test
# ---------------------------------------------------------------------------
if __name__ == "__main__":
    # MLPLayers([64, 32, 16], 0.2, 'relu') -- docstring example.
    # Dropout is a no-op in eval mode.
    layers = [64, 32, 16]

    key = jax.random.PRNGKey(0)
    key, k_x = jax.random.split(key)
    params = init_mlp_params(key, layers)

    # Case 1: docstring example shape (128, 64), f32, auto tiling
    # (grid split into >=2 steps so both v7x TensorCores get work).
    batch = 128
    x = jax.random.normal(k_x, (batch, layers[0]), jnp.float32)
    out = jax.block_until_ready(mlp_layers_forward(x, params))
    ref = _reference_forward(x, params)
    assert out.shape == (batch, layers[-1])
    assert jnp.allclose(out, ref, atol=1e-5, rtol=1e-5)

    # Case 2: ragged batch + explicit small row tile -- exercises grid > 2 and
    # the clipped last-block writeback (no wrapper-side pad / slice passes).
    batch2 = 200
    x2 = jax.random.normal(jax.random.PRNGKey(1), (batch2, layers[0]), jnp.float32)
    out2 = jax.block_until_ready(mlp_layers_forward(x2, params, block_rows=64))
    ref2 = _reference_forward(x2, params)
    assert out2.shape == (batch2, layers[-1])
    assert jnp.allclose(out2, ref2, atol=1e-5, rtol=1e-5)

    # Case 3: bf16 MXU operands -- weights pre-cast ONCE outside the jit,
    # x cast in-kernel, f32 accumulation / bias / activation.
    params_bf16 = prepare_mlp_params(params, jnp.bfloat16)
    out3 = jax.block_until_ready(mlp_layers_forward(x, params_bf16))
    assert jnp.allclose(out3, ref, atol=5e-2, rtol=5e-2)

    # Case 4: extra leading dims (N, *, H_in) and last_activation=False.
    x4 = jax.random.normal(jax.random.PRNGKey(2), (4, 7, layers[0]), jnp.float32)
    out4 = jax.block_until_ready(
        mlp_layers_forward(x4, params, last_activation=False))
    ref4 = _reference_forward(x4, params, last_activation=False)
    assert out4.shape == (4, 7, layers[-1])
    assert jnp.allclose(out4, ref4, atol=1e-5, rtol=1e-5)

    print("KERNEL_OK")
</pallas_src>

<mosaic_0001>
module attributes {stable_mosaic.version = 11 : i64} {
  func.func @kernel(%arg0: i32, %arg1: memref<64x64xf32, #tpu.memory_space<vmem>>, %arg2: memref<64x32xf32, #tpu.memory_space<vmem>>, %arg3: memref<1x32xf32, #tpu.memory_space<vmem>>, %arg4: memref<32x16xf32, #tpu.memory_space<vmem>>, %arg5: memref<1x16xf32, #tpu.memory_space<vmem>>, %arg6: memref<64x16xf32, #tpu.memory_space<vmem>>) attributes {dimension_semantics = [#tpu.dimension_semantics<parallel>], iteration_bounds = array<i64: 2>, scalar_prefetch = 0 : i64, scratch_operands = 0 : i64, tpu.core_type = #tpu.core_type<tc>, window_params = [{transform_indices = @transform_0, window_bounds = array<i64: 64, 64>}, {pipeline_mode = #tpu.pipeline_mode<synchronous>, transform_indices = @transform_1, window_bounds = array<i64: 64, 32>}, {pipeline_mode = #tpu.pipeline_mode<synchronous>, transform_indices = @transform_2, window_bounds = array<i64: 1, 32>}, {pipeline_mode = #tpu.pipeline_mode<synchronous>, transform_indices = @transform_3, window_bounds = array<i64: 32, 16>}, {pipeline_mode = #tpu.pipeline_mode<synchronous>, transform_indices = @transform_4, window_bounds = array<i64: 1, 16>}, {transform_indices = @transform_5, window_bounds = array<i64: 64, 16>}]} {
    %c0 = arith.constant 0 : index
    %c0_0 = arith.constant 0 : index
    %0 = vector.load %arg1[%c0, %c0_0] : memref<64x64xf32, #tpu.memory_space<vmem>>, vector<64x64xf32>
    %c0_1 = arith.constant 0 : index
    %c0_2 = arith.constant 0 : index
    %1 = vector.load %arg2[%c0_1, %c0_2] : memref<64x32xf32, #tpu.memory_space<vmem>>, vector<64x32xf32>
    %c0_3 = arith.constant 0 : index
    %c0_4 = arith.constant 0 : index
    %2 = vector.load %arg3[%c0_3, %c0_4] : memref<1x32xf32, #tpu.memory_space<vmem>>, vector<1x32xf32>
    %cst = arith.constant dense<0.000000e+00> : vector<64x32xf32>
    %3 = tpu.matmul %0, %1, %cst {dimension_numbers = #tpu.dot_dimension_numbers<[1], [0], [0], [1], [0, 0, 1, 1], [], []>} : vector<64x64xf32>, vector<64x32xf32>, vector<64x32xf32> -> vector<64x32xf32>
    %4 = vector.broadcast %2 : vector<1x32xf32> to vector<64x32xf32>
    %5 = arith.addf %3, %4 : vector<64x32xf32>
    %cst_5 = arith.constant 0.000000e+00 : f32
    %6 = vector.broadcast %cst_5 : f32 to vector<64x32xf32>
    %7 = arith.maximumf %5, %6 : vector<64x32xf32>
    %c0_6 = arith.constant 0 : index
    %c0_7 = arith.constant 0 : index
    %8 = vector.load %arg4[%c0_6, %c0_7] : memref<32x16xf32, #tpu.memory_space<vmem>>, vector<32x16xf32>
    %c0_8 = arith.constant 0 : index
    %c0_9 = arith.constant 0 : index
    %9 = vector.load %arg5[%c0_8, %c0_9] : memref<1x16xf32, #tpu.memory_space<vmem>>, vector<1x16xf32>
    %cst_10 = arith.constant dense<0.000000e+00> : vector<64x16xf32>
    %10 = tpu.matmul %7, %8, %cst_10 {dimension_numbers = #tpu.dot_dimension_numbers<[1], [0], [0], [1], [0, 0, 1, 1], [], []>} : vector<64x32xf32>, vector<32x16xf32>, vector<64x16xf32> -> vector<64x16xf32>
    %11 = vector.broadcast %9 : vector<1x16xf32> to vector<64x16xf32>
    %12 = arith.addf %10, %11 : vector<64x16xf32>
    %cst_11 = arith.constant 0.000000e+00 : f32
    %13 = vector.broadcast %cst_11 : f32 to vector<64x16xf32>
    %14 = arith.maximumf %12, %13 : vector<64x16xf32>
    %c0_12 = arith.constant 0 : index
    %c0_13 = arith.constant 0 : index
    %15 = vector.load %arg6[%c0_12, %c0_13] : memref<64x16xf32, #tpu.memory_space<vmem>>, vector<64x16xf32>
    tpu.vector_store %arg6[%c0_12, %c0_13], %14 {strides = array<i32>} : memref<64x16xf32, #tpu.memory_space<vmem>>, vector<64x16xf32>,
    return
  }
  func.func @transform_0(%arg0: i32) -> (i32, i32) {
    %c0_i32 = arith.constant 0 : i32
    %c0_i32_0 = arith.constant 0 : i32
    return %arg0, %c0_i32 : i32, i32
  }
  func.func @transform_1(%arg0: i32) -> (i32, i32) {
    %c0_i32 = arith.constant 0 : i32
    %c0_i32_0 = arith.constant 0 : i32
    %c0_i32_1 = arith.constant 0 : i32
    return %c0_i32, %c0_i32_0 : i32, i32
  }
  func.func @transform_2(%arg0: i32) -> (i32, i32) {
    %c0_i32 = arith.constant 0 : i32
    %c0_i32_0 = arith.constant 0 : i32
    %c0_i32_1 = arith.constant 0 : i32
    return %c0_i32, %c0_i32_0 : i32, i32
  }
  func.func @transform_3(%arg0: i32) -> (i32, i32) {
    %c0_i32 = arith.constant 0 : i32
    %c0_i32_0 = arith.constant 0 : i32
    %c0_i32_1 = arith.constant 0 : i32
    return %c0_i32, %c0_i32_0 : i32, i32
  }
  func.func @transform_4(%arg0: i32) -> (i32, i32) {
    %c0_i32 = arith.constant 0 : i32
    %c0_i32_0 = arith.constant 0 : i32
    %c0_i32_1 = arith.constant 0 : i32
    return %c0_i32, %c0_i32_0 : i32, i32
  }
  func.func @transform_5(%arg0: i32) -> (i32, i32) {
    %c0_i32 = arith.constant 0 : i32
    %c0_i32_0 = arith.constant 0 : i32
    return %arg0, %c0_i32 : i32, i32
  }
}

</mosaic_0001>

<bundles_post_ra>
// kernel: mlp_layers_forward.1
= control target key start
LH: loop header
LB: loop body
LE: loop exit
PB: predicated region body
PF: predicated region fallthrough
CT: control target
= control target key end

     0   :  { %s556_s18 = smov 0   ;;  %s656_s0 = inlined_call_operand.vmem [shape: f32[128,64], index: 0, kind: input, shape index: {}]   ;;  %s657_s1 = inlined_call_operand.vmem [shape: f32[64,32], index: 1, kind: input, shape index: {}]   ;;  %s658_s2 = inlined_call_operand.vmem [shape: f32[1,32], index: 2, kind: input, shape index: {}]   ;;  %s659_s3 = inlined_call_operand.vmem [shape: f32[32,16], index: 3, kind: input, shape index: {}]   ;;  %s660_s4 = inlined_call_operand.vmem [shape: f32[1,16], index: 4, kind: input, shape index: {}]   ;;  %s661_s5 = inlined_call_operand.vmem [shape: f32[128,16], index: 5, kind: output, shape index: {}]  }
   0x1 LB: > { %s469_s19 = sadd.s32 4294967295, %s524_s18   ;;  %p473_p0 = scmp.ge.s32.totalorder %s524_s18, 1  ;;  %s524_s18 = sphi %s556_s18, %s15_s18  }
   0x2   : > { %p188_p1 = scmp.lt.s32.totalorder %s524_s18, 3 }
   0x4   : > { %p189_p2 = pnand %p473_p0, %p188_p1 }
   0x5   : > { %s474_s24 = sshll.u32 (!%p189_p2), %s469_s19, 3 }
   0x6   : > { %192 = sbr.rel (%p189_p2) target bundleno = 324 (0x144), region = 40  ;;  %p217_p3 = scmp.lt.s32.totalorder (!%p189_p2), %s474_s24, 15 }
   0xb   : > { %v243_v0 = vld [vmem:[%s657_s1 + $0x38] sm:$0xff]  ;;  %v242_v1 = vld [vmem:[%s657_s1 + $0x30] sm:$0xff]  ;;  %v241_v2 = vld [vmem:[%s657_s1 + $0x28] sm:$0xff]  ;;  %s663_s24 = smov (!%p217_p3, %s474_s24), 15  ;;  %vm248_vm0 = vcmask 523264   ;;  %vm330_vm1 = vcmask 261120  }
   0xc   : > { %281 = vmatpush.msra.mxu0 %v243_v0  ;;  %496 = vmatpush.msra.mxu2 %v243_v0  ;;  %v240_v3 = vld [vmem:[%s657_s1 + $0x20] sm:$0xff]  ;;  %v239_v4 = vld [vmem:[%s657_s1 + $0x18] sm:$0xff]  ;;  %s475_s6 = sshll.u32 %s663_s24, 3  ;;  %v238_v5 = vld [vmem:[%s657_s1 + $0x10] sm:$0xff]  ;;  %vm404_vm2 = vcmask 130048  }
   0xd   : > { %v325_v6 = vld [vmem:[%s659_s3 + $0x18] sm:$0xff]  ;;  %v237_v7 = vld [vmem:[%s657_s1 + $0x8] sm:$0xff]  ;;  %s220_s15 = scalar_lea.vmem %s656_s0, %s475_s6  ;;  %v236_v8 = vld [vmem:[%s657_s1] sm:$0xff]  ;;  %s635_s8 = scalar_lea.vmem %s661_s5, %s475_s6 }
   0xe   : > { %282 = vmatpush.msra.mxu0 %v242_v1  ;;  %497 = vmatpush.msra.mxu2 %v242_v1  ;;  %v228_v9 = vld [vmem:[%s220_s15] sm:$0xff]  ;;  %v229_v11 = vld [vmem:[%s220_s15 + $0x8] sm:$0xff]  ;;  %v230_v13 = vld [vmem:[%s220_s15 + $0x10] sm:$0xff] }
   0xf   : > { %367 = vmatpush.msra.mxu1 %v325_v6  ;;  %504 = vmatpush.msra.mxu3 %v325_v6  ;;  %v232_v10 = vld [vmem:[%s220_s15 + $0x20] sm:$0xff]  ;;  %v233_v12 = vld [vmem:[%s220_s15 + $0x28] sm:$0xff]  ;;  %v234_v14 = vld [vmem:[%s220_s15 + $0x30] sm:$0xff] }
  0x10   : > { %283 = vmatpush.msra.mxu0 %v241_v2  ;;  %498 = vmatpush.msra.mxu2 %v241_v2  ;;  %v231_v15 = vld [vmem:[%s220_s15 + $0x18] sm:$0xff]  ;;  %v324_v17 = vld [vmem:[%s659_s3 + $0x10] sm:$0xff]  ;;  %v323_v18 = vld [vmem:[%s659_s3 + $0x8] sm:$0xff] }
  0x11   : > { %v235_v16 = vld [vmem:[%s220_s15 + $0x38] sm:$0xff]  ;;  %368 = vmatpush.msra.mxu1 %v324_v17  ;;  %505 = vmatpush.msra.mxu3 %v324_v17  ;;  %v322_v19 = vld [vmem:[%s659_s3] sm:$0xff] }
  0x12   : > { %284 = vmatpush.msra.mxu0 %v240_v3  ;;  %499 = vmatpush.msra.mxu2 %v240_v3  ;;  %v516_v20 = vld [vmem:[%s658_s2] ss:$0 sm:$0xff] }
  0x13   : > { %369 = vmatpush.msra.mxu1 %v323_v18  ;;  %506 = vmatpush.msra.mxu3 %v323_v18  ;;  %v517_v45 = vld [vmem:[%s660_s4] ss:$0 sm:$0xff] }
  0x14   : > { %285 = vmatpush.msra.mxu0 %v239_v4  ;;  %500 = vmatpush.msra.mxu2 %v239_v4 }
  0x15   : > { %370 = vmatpush.msra.mxu1 %v322_v19  ;;  %507 = vmatpush.msra.mxu3 %v322_v19 }
  0x16   : > { %286 = vmatpush.msra.mxu0 %v238_v5  ;;  %501 = vmatpush.msra.mxu2 %v238_v5 }
  0x18   : > { %287 = vmatpush.msra.mxu0 %v237_v7  ;;  %502 = vmatpush.msra.mxu2 %v237_v7 }
  0x1a   : > { %288 = vmatpush.msra.mxu0 %v236_v8  ;;  %503 = vmatpush.msra.mxu2 %v236_v8 }
  0x1b   : > { %478 = vmatmul.msk.f32.vlgmr.msra.gmra.mxu0 %vm248_vm0, %v228_v9  ;;  %482 = vmatmul.msk.f32.vlgmr.msra.gmra.mxu2 %vm248_vm0, %v232_v10 }
  0x23   : > { %479 = vmatmul.msk.f32.gmra.mxu0 %vm248_vm0, %v229_v11  ;;  %483 = vmatmul.msk.f32.gmra.mxu2 %vm248_vm0, %v233_v12 }
  0x2b   : > { %480 = vmatmul.msk.f32.gmra.mxu0 %vm248_vm0, %v230_v13  ;;  %484 = vmatmul.msk.f32.gmra.mxu2 %vm248_vm0, %v234_v14 }
  0x33   : > { %481 = vmatmul.msk.f32.gmra.mxu0 %vm248_vm0, %v231_v15  ;;  %485 = vmatmul.msk.f32.gmra.mxu2 %vm248_vm0, %v235_v16 }
  0x98   : > { %v290_v21 = vpop.f32.mrf.mxu0 }
  0x99   : > { %v291_v22 = vadd.f32 %v516_v20, %v290_v21 }
  0x9b   : > { %v314_v23 = vmax.f32 %v291_v22, 0.0 }
  0x9d   : > { %486 = vmatmul.msk.f32.vlgmr.msra.gmra.mxu1 %vm330_vm1, %v314_v23 }
  0x9e   : > { %v302_v24 = vpop.f32.mrf.mxu2 }
  0x9f   : > { %v303_v41 = vadd.f32 %v516_v20, %v302_v24 }
  0xa0   : > { %v293_v25 = vpop.f32.mrf.mxu0 }
  0xa1   : > { %v294_v26 = vadd.f32 %v516_v20, %v293_v25  ;;  %v318_v44 = vmax.f32 %v303_v41, 0.0 }
  0xa3   : > { %v315_v27 = vmax.f32 %v294_v26, 0.0 }
  0xa5   : > { %487 = vmatmul.msk.f32.gmra.mxu1 %vm330_vm1, %v315_v27 }
  0xa6   : > { %v305_v28 = vpop.f32.mrf.mxu2 }
  0xa7   : > { %v306_v29 = vadd.f32 %v516_v20, %v305_v28 }
  0xa8   : > { %v296_v30 = vpop.f32.mrf.mxu0 }
  0xa9   : > { %v319_v31 = vmax.f32 %v306_v29, 0.0  ;;  %v297_v32 = vadd.f32 %v516_v20, %v296_v30 }
  0xab   : > { %v316_v33 = vmax.f32 %v297_v32, 0.0  ;;  %491 = vmatmul.msk.f32.vlgmr.msra.gmra.mxu3 %vm330_vm1, %v319_v31 }
  0xad   : > { %488 = vmatmul.msk.f32.gmra.mxu1 %vm330_vm1, %v316_v33 }
  0xae   : > { %v308_v34 = vpop.f32.mrf.mxu2 }
  0xaf   : > { %v309_v35 = vadd.f32 %v516_v20, %v308_v34 }
  0xb0   : > { %v299_v36 = vpop.f32.mrf.mxu0 }
  0xb1   : > { %v320_v37 = vmax.f32 %v309_v35, 0.0  ;;  %v300_v38 = vadd.f32 %v516_v20, %v299_v36 }
  0xb3   : > { %v317_v39 = vmax.f32 %v300_v38, 0.0  ;;  %492 = vmatmul.msk.f32.gmra.mxu3 %vm330_vm1, %v320_v37 }
  0xb5   : > { %489 = vmatmul.msk.f32.gmra.mxu1 %vm330_vm1, %v317_v39 }
  0xb6   : > { %v311_v40 = vpop.f32.mrf.mxu2 }
  0xb7   : > { %v312_v42 = vadd.f32 %v516_v20, %v311_v40 }
  0xb9   : > { %v321_v43 = vmax.f32 %v312_v42, 0.0 }
  0xbb   : > { %493 = vmatmul.msk.f32.gmra.mxu3 %vm330_vm1, %v321_v43 }
  0xbd   : > { %490 = vmatmul.msk.f32.gmra.mxu1 %vm330_vm1, %v318_v44 }
 0x11a   : > { %v372_v46 = vpop.f32.mrf.mxu1 }
 0x11b   : > { %v373_v47 = vadd.f32 %v517_v45, %v372_v46 }
 0x11d   : > { %v396_v48 = vmax.f32 %v373_v47, 0.0 }
 0x11f   : > { %405 = vst.msk [vmem:[%s635_s8] sm:$0xff] %vm404_vm2, %v396_v48 }
 0x122   : > { %v375_v49 = vpop.f32.mrf.mxu1 }
 0x123   : > { %v376_v50 = vadd.f32 %v517_v45, %v375_v49 }
 0x125   : > { %v397_v51 = vmax.f32 %v376_v50, 0.0 }
 0x127   : > { %406 = vst.msk [vmem:[%s635_s8 + $0x8] sm:$0xff] %vm404_vm2, %v397_v51 }
 0x12a   : > { %v378_v52 = vpop.f32.mrf.mxu1 }
 0x12b   : > { %v379_v53 = vadd.f32 %v517_v45, %v378_v52 }
 0x12d   : > { %v398_v54 = vmax.f32 %v379_v53, 0.0 }
 0x12e   : > { %v387_v55 = vpop.f32.mrf.mxu3 }
 0x12f   : > { %407 = vst.msk [vmem:[%s635_s8 + $0x10] sm:$0xff] %vm404_vm2, %v398_v54  ;;  %v388_v56 = vadd.f32 %v517_v45, %v387_v55 }
 0x131   : > { %v401_v57 = vmax.f32 %v388_v56, 0.0 }
 0x132   : > { %v381_v58 = vpop.f32.mrf.mxu1 }
 0x133   : > { %410 = vst.msk [vmem:[%s635_s8 + $0x28] sm:$0xff] %vm404_vm2, %v401_v57  ;;  %v382_v59 = vadd.f32 %v517_v45, %v381_v58 }
 0x135   : > { %v399_v60 = vmax.f32 %v382_v59, 0.0 }
 0x136   : > { %v390_v61 = vpop.f32.mrf.mxu3 }
 0x137   : > { %408 = vst.msk [vmem:[%s635_s8 + $0x18] sm:$0xff] %vm404_vm2, %v399_v60  ;;  %v391_v62 = vadd.f32 %v517_v45, %v390_v61 }
 0x139   : > { %v402_v63 = vmax.f32 %v391_v62, 0.0 }
 0x13a   : > { %v384_v0 = vpop.f32.mrf.mxu1 }
 0x13b   : > { %411 = vst.msk [vmem:[%s635_s8 + $0x30] sm:$0xff] %vm404_vm2, %v402_v63  ;;  %v385_v1 = vadd.f32 %v517_v45, %v384_v0 }
 0x13d   : > { %v400_v2 = vmax.f32 %v385_v1, 0.0 }
 0x13e   : > { %v393_v3 = vpop.f32.mrf.mxu3 }
 0x13f   : > { %409 = vst.msk [vmem:[%s635_s8 + $0x20] sm:$0xff] %vm404_vm2, %v400_v2  ;;  %v394_v4 = vadd.f32 %v517_v45, %v393_v3 }
 0x141   : > { %v403_v5 = vmax.f32 %v394_v4, 0.0 }
 0x143   : > { %412 = vst.msk [vmem:[%s635_s8 + $0x38] sm:$0xff] %vm404_vm2, %v403_v5 }
 0x144 PF: > { %s15_s18 = sadd.s32 1, %s524_s18  }
 0x145   : > { %p12_p4 = scmp.ge.s32.totalorder %s15_s18, 4  }
 0x147   :  { %14 = sbr.rel (!%p12_p4) target bundleno = 1 (0x1), region = 70 }

</bundles_post_ra>
